<compile_context>
chip_gen: v7x
topology: tpu7x:2x2x1
jax: 0.10.0
libtpu: 0.0.40
codegen_flags: <defaults>
</compile_context>

<pallas_src>
import math
import jax
import jax.numpy as jnp
from jax.experimental import pallas as pl
from jax.experimental.pallas import tpu as pltpu

EPS = 1e-5
MXU_DTYPE = jnp.bfloat16  # MXU operand dtype; all accumulation / BN math in f32


# --------------------------------------------------------------------------
# Tile pickers (shapes here always divide exactly; fallback = full dim).
# --------------------------------------------------------------------------
def _pick_row_tile(m, cap=512):
    for t in (cap, 256, 128, 64, 32, 16, 8):
        if t <= m and m % t == 0:
            return t
    return m


def _pick_col_tile(n, cap=256):
    for t in (cap, 128):
        if t <= n and n % t == 0:
            return t
    return n


# --------------------------------------------------------------------------
# Conv matmul kernel with fused BatchNorm-statistics epilogue.
#   grid = (N_tiles, M_tiles): N parallel (outer), M arbitrary/serial (inner)
#   so the (1, tn) stat outputs stay resident and accumulate across M tiles.
# --------------------------------------------------------------------------
def _conv_stats_kernel(a_ref, b_ref, o_ref, sum_ref, ssq_ref):
    @pl.when(pl.program_id(1) == 0)
    def _():
        sum_ref[...] = jnp.zeros_like(sum_ref)
        ssq_ref[...] = jnp.zeros_like(ssq_ref)

    y = jnp.dot(a_ref[...], b_ref[...], preferred_element_type=jnp.float32)
    o_ref[...] = y
    sum_ref[...] += jnp.sum(y, axis=0, keepdims=True)
    ssq_ref[...] += jnp.sum(y * y, axis=0, keepdims=True)


def conv_matmul_stats(a, b):
    """a: (M, K) bf16 im2col patches, b: (K, Cout) bf16 weight.
    Returns conv output (M, Cout) f32 plus per-channel sum / sumsq (1, Cout)."""
    M, K = a.shape
    Kb, N = b.shape
    assert K == Kb
    if K % 128 != 0:  # only the 3->64 stem conv (K=27); tiny one-time zero pad
        Kp = pl.cdiv(K, 128) * 128
        a = jnp.pad(a, ((0, 0), (0, Kp - K)))
        b = jnp.pad(b, ((0, Kp - K), (0, 0)))
        K = Kp
    tm = _pick_row_tile(M)
    tn = _pick_col_tile(N)
    grid = (N // tn, M // tm)

    y, s, ss = pl.pallas_call(
        _conv_stats_kernel,
        out_shape=(jax.ShapeDtypeStruct((M, N), jnp.float32),
                   jax.ShapeDtypeStruct((1, N), jnp.float32),
                   jax.ShapeDtypeStruct((1, N), jnp.float32)),
        grid_spec=pltpu.PrefetchScalarGridSpec(
            num_scalar_prefetch=0,
            grid=grid,
            in_specs=[pl.BlockSpec((tm, K), lambda j, i: (i, 0)),
                      pl.BlockSpec((K, tn), lambda j, i: (0, j))],
            out_specs=[pl.BlockSpec((tm, tn), lambda j, i: (i, j)),
                       pl.BlockSpec((1, tn), lambda j, i: (0, j)),
                       pl.BlockSpec((1, tn), lambda j, i: (0, j))]),
        compiler_params=pltpu.CompilerParams(
            dimension_semantics=("parallel", "arbitrary")),
    )(a, b)
    return y, s, ss


# --------------------------------------------------------------------------
# im2col glue (XLA).  Activations are NHWC bf16, weight rows are ordered
# (dy*KW + dx)*Cin + cin to match the pre-transposed weight layout.
# --------------------------------------------------------------------------
def _im2col(x, k, stride, padding):
    N, H, W, Cin = x.shape
    OH = (H + 2 * padding - k) // stride + 1
    OW = (W + 2 * padding - k) // stride + 1
    if padding:
        x = jnp.pad(x, ((0, 0), (padding, padding), (padding, padding), (0, 0)))
    if k == 1:
        a = x[:, ::stride, ::stride, :]
        return a.reshape(N * OH * OW, Cin), (N, OH, OW)
    patches = []
    for dy in range(k):
        for dx in range(k):
            patches.append(x[:, dy:dy + (OH - 1) * stride + 1:stride,
                               dx:dx + (OW - 1) * stride + 1:stride, :])
    a = jnp.stack(patches, axis=3).reshape(N * OH * OW, k * k * Cin)
    return a, (N, OH, OW)


# --------------------------------------------------------------------------
# BatchNorm normalize (+residual) (+ReLU) kernel: stats come precomputed from
# the matmul epilogue, so this is a single read -> single write pass,
# row-tiled with a grid (scales beyond VMEM, pipelines DMA with VPU work).
# --------------------------------------------------------------------------
def _make_bn_kernel(rows, do_relu, has_res):
    inv_rows = 1.0 / float(rows)

    def normalize(x, s, ss, g, b, res):
        mean = s * inv_rows
        var = jnp.maximum(ss * inv_rows - mean * mean, 0.0)
        scale = jax.lax.rsqrt(var + EPS) * g
        shift = b - mean * scale
        y = x * scale + shift
        if res is not None:
            y = y + res.astype(jnp.float32)
        if do_relu:
            y = jnp.maximum(y, 0.0)
        return y

    if has_res:
        def kernel(x_ref, s_ref, ss_ref, g_ref, b_ref, r_ref, o_ref):
            o_ref[...] = normalize(x_ref[...], s_ref[...], ss_ref[...],
                                   g_ref[...], b_ref[...],
                                   r_ref[...]).astype(o_ref.dtype)
    else:
        def kernel(x_ref, s_ref, ss_ref, g_ref, b_ref, o_ref):
            o_ref[...] = normalize(x_ref[...], s_ref[...], ss_ref[...],
                                   g_ref[...], b_ref[...],
                                   None).astype(o_ref.dtype)
    return kernel


def batchnorm_apply(x2d, s, ss, gamma, beta, *, relu=False, residual2d=None):
    M, C = x2d.shape
    tr = _pick_row_tile(M)
    vec_spec = pl.BlockSpec((1, C), lambda i: (0, 0))
    in_specs = [pl.BlockSpec((tr, C), lambda i: (i, 0)),
                vec_spec, vec_spec, vec_spec, vec_spec]
    args = [x2d, s, ss, gamma, beta]
    if residual2d is not None:
        in_specs.append(pl.BlockSpec((tr, C), lambda i: (i, 0)))
        args.append(residual2d)
    kernel = _make_bn_kernel(M, relu, residual2d is not None)
    return pl.pallas_call(
        kernel,
        out_shape=jax.ShapeDtypeStruct((M, C), MXU_DTYPE),
        grid_spec=pltpu.PrefetchScalarGridSpec(
            num_scalar_prefetch=0,
            grid=(M // tr,),
            in_specs=in_specs,
            out_specs=pl.BlockSpec((tr, C), lambda i: (i, 0))),
        compiler_params=pltpu.CompilerParams(
            dimension_semantics=("parallel",)),
    )(*args)


# --------------------------------------------------------------------------
# Head: AvgPool2d(4) over the final 4x4 map fused with the Linear layer.
# FC weight/bias pre-padded to 128 output lanes -> lane-dense output store.
# --------------------------------------------------------------------------
def _head_kernel(x_ref, w_ref, b_ref, o_ref):
    pooled = jnp.mean(x_ref[...].astype(jnp.float32), axis=1)   # (N, C)
    o_ref[...] = (jnp.dot(pooled, w_ref[...],
                          preferred_element_type=jnp.float32) + b_ref[...])


def head(x, fc_w, fc_b, num_classes):
    N, H, W, C = x.shape
    out = pl.pallas_call(
        _head_kernel,
        out_shape=jax.ShapeDtypeStruct((N, fc_w.shape[1]), jnp.float32),
    )(x.reshape(N, H * W, C), fc_w, fc_b)
    return out[:, :num_classes]


# --------------------------------------------------------------------------
# Fused conv + BN (+residual, +ReLU) building block.
# --------------------------------------------------------------------------
def conv_bn(x, w, gamma, beta, *, ksize, stride, padding, relu, residual=None):
    a, (N, OH, OW) = _im2col(x, ksize, stride, padding)
    y, s, ss = conv_matmul_stats(a, w)
    cout = w.shape[1]
    res2d = None if residual is None else residual.reshape(N * OH * OW, cout)
    out2d = batchnorm_apply(y, s, ss, gamma, beta, relu=relu, residual2d=res2d)
    return out2d.reshape(N, OH, OW, cout)


def basic_block_forward(x, p):
    stride = p["stride"]
    out = conv_bn(x, p["conv1_w"], p["bn1_g"], p["bn1_b"],
                  ksize=3, stride=stride, padding=1, relu=True)
    if "down_w" in p:
        sc = conv_bn(x, p["down_w"], p["down_g"], p["down_b"],
                     ksize=1, stride=stride, padding=0, relu=False)
    else:
        sc = x
    # out = relu(bn2(conv2(out)) + shortcut), residual+ReLU fused into BN pass
    return conv_bn(out, p["conv2_w"], p["bn2_g"], p["bn2_b"],
                   ksize=3, stride=1, padding=1, relu=True, residual=sc)


def resnet_forward(x_nchw, params):
    x = jnp.transpose(x_nchw, (0, 2, 3, 1)).astype(MXU_DTYPE)   # NCHW -> NHWC
    x = conv_bn(x, params["conv1_w"], params["bn1_g"], params["bn1_b"],
                ksize=3, stride=1, padding=1, relu=True)
    for layer_blocks in params["layers"]:
        for bp in layer_blocks:
            x = basic_block_forward(x, bp)
    # final feature map is (N, 4, 4, 512); AvgPool2d(4) + view + fc fused below
    return head(x, params["fc_w"], params["fc_b"], params["num_classes"])


# --------------------------------------------------------------------------
# Parameters.  Conv weights are generated directly in the matmul layout
# (KH*KW*Cin, Cout) bf16 (iid normal, std sqrt(2/(k*k*Cout)) as in the
# reference init), so no per-call transpose / cast is needed.
# --------------------------------------------------------------------------
def _conv_weight(key, cout, cin, k):
    n = k * k * cout
    w = jax.random.normal(key, (k * k * cin, cout), jnp.float32) * math.sqrt(2.0 / n)
    return w.astype(MXU_DTYPE)


def _bn_params(c):
    return jnp.ones((1, c), jnp.float32), jnp.zeros((1, c), jnp.float32)


def make_basic_block_params(key, inplanes, planes, stride):
    k0, k1, k2 = jax.random.split(key, 3)
    g1, b1 = _bn_params(planes)
    g2, b2 = _bn_params(planes)
    p = {"stride": stride,
         "conv1_w": _conv_weight(k0, planes, inplanes, 3),
         "bn1_g": g1, "bn1_b": b1,
         "conv2_w": _conv_weight(k1, planes, planes, 3),
         "bn2_g": g2, "bn2_b": b2}
    if stride != 1 or inplanes != planes:  # BasicBlock downsample (expansion=1)
        gd, bd = _bn_params(planes)
        p["down_w"] = _conv_weight(k2, planes, inplanes, 1)
        p["down_g"], p["down_b"] = gd, bd
    return p


def make_resnet_params(key, layers=(1, 1, 1, 1), num_classes=10):
    g1, b1 = _bn_params(64)
    params = {"conv1_w": _conv_weight(jax.random.fold_in(key, 0), 64, 3, 3),
              "bn1_g": g1, "bn1_b": b1, "num_classes": num_classes}
    inplanes, kidx, all_layers = 64, 1, []
    for planes, nblocks, stride in zip((64, 128, 256, 512), layers, (1, 2, 2, 2)):
        blocks = []
        for s in [stride] + [1] * (nblocks - 1):
            blocks.append(make_basic_block_params(
                jax.random.fold_in(key, kidx), inplanes, planes, s))
            kidx += 1
            inplanes = planes
        all_layers.append(blocks)
    params["layers"] = all_layers
    # FC padded once to a 128-lane-dense output width.
    bound = 1.0 / math.sqrt(512)
    fc_w = jax.random.uniform(jax.random.fold_in(key, 100), (512, num_classes),
                              jnp.float32, -bound, bound)
    fc_b = jax.random.uniform(jax.random.fold_in(key, 101), (num_classes,),
                              jnp.float32, -bound, bound)
    padded = pl.cdiv(num_classes, 128) * 128
    params["fc_w"] = jnp.pad(fc_w, ((0, 0), (0, padded - num_classes)))
    params["fc_b"] = jnp.pad(fc_b, ((0, padded - num_classes),)).reshape(1, padded)
    return params


if __name__ == "__main__":
    key = jax.random.PRNGKey(0)
    kx, kp = jax.random.split(key)
    # CIFAR-style input implied by AvgPool2d(4) after three stride-2 stages.
    x = jax.random.normal(kx, (2, 3, 32, 32), jnp.float32)  # NCHW (PyTorch)
    params = make_resnet_params(kp, layers=(1, 1, 1, 1), num_classes=10)
    out = resnet_forward(x, params)
    out = jax.block_until_ready(out)
    assert out.shape == (2, 10) and out.dtype == jnp.float32
    assert bool(jnp.all(jnp.isfinite(out)))
    print("KERNEL_OK")
</pallas_src>

<mosaic_0001>
module attributes {stable_mosaic.version = 11 : i64} {
  func.func @_conv_stats_kernel(%arg0: i32, %arg1: i32, %arg2: memref<512x128xbf16, #tpu.memory_space<vmem>>, %arg3: memref<128x64xbf16, #tpu.memory_space<vmem>>, %arg4: memref<512x64xf32, #tpu.memory_space<vmem>>, %arg5: memref<1x64xf32, #tpu.memory_space<vmem>>, %arg6: memref<1x64xf32, #tpu.memory_space<vmem>>) attributes {dimension_semantics = [#tpu.dimension_semantics<parallel>, #tpu.dimension_semantics<arbitrary>], iteration_bounds = array<i64: 1, 4>, scalar_prefetch = 0 : i64, scratch_operands = 0 : i64, tpu.core_type = #tpu.core_type<tc>, window_params = [{transform_indices = @transform_0, window_bounds = array<i64: 512, 128>}, {transform_indices = @transform_1, window_bounds = array<i64: 128, 64>}, {transform_indices = @transform_2, window_bounds = array<i64: 512, 64>}, {transform_indices = @transform_3, window_bounds = array<i64: 1, 64>}, {transform_indices = @transform_4, window_bounds = array<i64: 1, 64>}]} {
    %c0_i32 = arith.constant 0 : i32
    %0 = arith.cmpi eq, %arg1, %c0_i32 : i32
    %1 = arith.extui %0 : i1 to i32
    %c0_i32_0 = arith.constant 0 : i32
    %2 = arith.cmpi ne, %1, %c0_i32_0 : i32
    scf.if %2 {
      %cst_16 = arith.constant 0.000000e+00 : f32
      %18 = vector.broadcast %cst_16 : f32 to vector<1x64xf32>
      %c0_17 = arith.constant 0 : index
      %c0_18 = arith.constant 0 : index
      %19 = vector.load %arg5[%c0_17, %c0_18] : memref<1x64xf32, #tpu.memory_space<vmem>>, vector<1x64xf32>
      tpu.vector_store %arg5[%c0_17, %c0_18], %18 {strides = array<i32>} : memref<1x64xf32, #tpu.memory_space<vmem>>, vector<1x64xf32>,
      %cst_19 = arith.constant 0.000000e+00 : f32
      %20 = vector.broadcast %cst_19 : f32 to vector<1x64xf32>
      %c0_20 = arith.constant 0 : index
      %c0_21 = arith.constant 0 : index
      %21 = vector.load %arg6[%c0_20, %c0_21] : memref<1x64xf32, #tpu.memory_space<vmem>>, vector<1x64xf32>
      tpu.vector_store %arg6[%c0_20, %c0_21], %20 {strides = array<i32>} : memref<1x64xf32, #tpu.memory_space<vmem>>, vector<1x64xf32>,
    } else {
    }
    %c0 = arith.constant 0 : index
    %c0_1 = arith.constant 0 : index
    %3 = vector.load %arg2[%c0, %c0_1] : memref<512x128xbf16, #tpu.memory_space<vmem>>, vector<512x128xbf16>
    %c0_2 = arith.constant 0 : index
    %c0_3 = arith.constant 0 : index
    %4 = vector.load %arg3[%c0_2, %c0_3] : memref<128x64xbf16, #tpu.memory_space<vmem>>, vector<128x64xbf16>
    %cst = arith.constant dense<0.000000e+00> : vector<512x64xf32>
    %5 = tpu.matmul %3, %4, %cst {dimension_numbers = #tpu.dot_dimension_numbers<[1], [0], [0], [1], [0, 0, 1, 1], [], []>} : vector<512x128xbf16>, vector<128x64xbf16>, vector<512x64xf32> -> vector<512x64xf32>
    %c0_4 = arith.constant 0 : index
    %c0_5 = arith.constant 0 : index
    %6 = vector.load %arg4[%c0_4, %c0_5] : memref<512x64xf32, #tpu.memory_space<vmem>>, vector<512x64xf32>
    tpu.vector_store %arg4[%c0_4, %c0_5], %5 {strides = array<i32>} : memref<512x64xf32, #tpu.memory_space<vmem>>, vector<512x64xf32>,
    %c0_6 = arith.constant 0 : index
    %c0_7 = arith.constant 0 : index
    %7 = vector.load %arg5[%c0_6, %c0_7] : memref<1x64xf32, #tpu.memory_space<vmem>>, vector<1x64xf32>
    %cst_8 = arith.constant dense<0.000000e+00> : vector<64xf32>
    %8 = vector.multi_reduction <add>, %5, %cst_8 [0] : vector<512x64xf32> to vector<64xf32>
    %9 = vector.shape_cast %8 : vector<64xf32> to vector<1x64xf32>
    %10 = arith.addf %7, %9 : vector<1x64xf32>
    %c0_9 = arith.constant 0 : index
    %c0_10 = arith.constant 0 : index
    %11 = vector.load %arg5[%c0_9, %c0_10] : memref<1x64xf32, #tpu.memory_space<vmem>>, vector<1x64xf32>
    tpu.vector_store %arg5[%c0_9, %c0_10], %10 {strides = array<i32>} : memref<1x64xf32, #tpu.memory_space<vmem>>, vector<1x64xf32>,
    %c0_11 = arith.constant 0 : index
    %c0_12 = arith.constant 0 : index
    %12 = vector.load %arg6[%c0_11, %c0_12] : memref<1x64xf32, #tpu.memory_space<vmem>>, vector<1x64xf32>
    %13 = arith.mulf %5, %5 : vector<512x64xf32>
    %cst_13 = arith.constant dense<0.000000e+00> : vector<64xf32>
    %14 = vector.multi_reduction <add>, %13, %cst_13 [0] : vector<512x64xf32> to vector<64xf32>
    %15 = vector.shape_cast %14 : vector<64xf32> to vector<1x64xf32>
    %16 = arith.addf %12, %15 : vector<1x64xf32>
    %c0_14 = arith.constant 0 : index
    %c0_15 = arith.constant 0 : index
    %17 = vector.load %arg6[%c0_14, %c0_15] : memref<1x64xf32, #tpu.memory_space<vmem>>, vector<1x64xf32>
    tpu.vector_store %arg6[%c0_14, %c0_15], %16 {strides = array<i32>} : memref<1x64xf32, #tpu.memory_space<vmem>>, vector<1x64xf32>,
    return
  }
  func.func @transform_0(%arg0: i32, %arg1: i32) -> (i32, i32) {
    %c0_i32 = arith.constant 0 : i32
    %c0_i32_0 = arith.constant 0 : i32
    return %arg1, %c0_i32 : i32, i32
  }
  func.func @transform_1(%arg0: i32, %arg1: i32) -> (i32, i32) {
    %c0_i32 = arith.constant 0 : i32
    %c0_i32_0 = arith.constant 0 : i32
    return %c0_i32, %arg0 : i32, i32
  }
  func.func @transform_2(%arg0: i32, %arg1: i32) -> (i32, i32) {
    %c0_i32 = arith.constant 0 : i32
    return %arg1, %arg0 : i32, i32
  }
  func.func @transform_3(%arg0: i32, %arg1: i32) -> (i32, i32) {
    %c0_i32 = arith.constant 0 : i32
    %c0_i32_0 = arith.constant 0 : i32
    return %c0_i32, %arg0 : i32, i32
  }
  func.func @transform_4(%arg0: i32, %arg1: i32) -> (i32, i32) {
    %c0_i32 = arith.constant 0 : i32
    %c0_i32_0 = arith.constant 0 : i32
    return %c0_i32, %arg0 : i32, i32
  }
}

</mosaic_0001>

<bundles_post_ra>
// kernel: tpu_custom_call.1
= control target key start
LH: loop header
LB: loop body
LE: loop exit
PB: predicated region body
PF: predicated region fallthrough
CT: control target
= control target key end

     0   :  { %10 = vsyncpa [#allocation3], 0  ;;  %s2613_s0 = inlined_call_operand.hbm [shape: bf16[2048,128], index: 0, kind: input, shape index: {}]   ;;  %s2614_s1 = inlined_call_operand.vmem [shape: bf16[128,64], index: 1, kind: input, shape index: {}]   ;;  %s2615_s2 = inlined_call_operand.vmem [shape: f32[2048,64], index: 2, kind: output, shape index: {0}]   ;;  %s2616_s3 = inlined_call_operand.hbm [shape: f32[1,64], index: 3, kind: output, shape index: {1}]   ;;  %s2617_s4 = inlined_call_operand.hbm [shape: f32[1,64], index: 4, kind: output, shape index: {2}]  }
   0x1   :  { %12 = vsyncpa [#allocation3 + $0x1], 0 }
   0x2   :  { %13 = vsyncpa [#allocation4], 0 }
   0x3   :  { %14 = vsyncpa [#allocation7], 0  ;;  %s1919_s15 = smov 0   ;;  %s1921_s16 = smov 0  }
   0x4   :  { %s1923_s17 = smov 0   ;;  %s1925_s18 = smov 0  }
   0x5   :  { %s1927_s19 = smov 0   ;;  %s1929_s20 = smov 0  }
   0x6 LB: > { %s1438_s21 = sadd.s32 4294967295, %s1886_s20   ;;  %s29_s22 = sadd.s32 1, %s1882_s19  ;;  %s1886_s20 = sphi %s1929_s20, %s20_s20   ;;  %s1882_s19 = sphi %s1927_s19, %s2626_s19   ;;  %s1878_s18 = sphi %s1925_s18, %s2625_s18   ;;  %s1874_s17 = sphi %s1923_s17, %s2624_s17   ;;  %s1870_s16 = sphi %s1921_s16, %s2623_s16   ;;  %s1866_s15 = sphi %s1919_s15, %s2622_s15  }
   0x7   : > { %p30_p0 = scmp.ge.s32.totalorder %s29_s22, 4  ;;  %s39_s23 = sadd.s32 1, %s1874_s17 }
   0x8   : > { %p46_p1 = scmp.ne.s32.totalorder %s1874_s17, %s1870_s16  ;;  %p47_p2 = scmp.eq.s32.totalorder %s1886_s20, 0 }
   0x9   : > { %s2628_s22 = smov (%p30_p0, %s29_s22), 0  ;;  %p52_p4 = scmp.ne.s32.totalorder %s1870_s16, %s1866_s15 }
   0xa   : > { %p1955_p3 = por %p47_p2, %p46_p1  ;;  %s36_s25 = ssub.s32 %s1882_s19, %s2628_s22 }
   0xb   : > { %p53_p5 = scmp.eq.s32.totalorder %s1438_s21, 0  ;;  %p37_p6 = scmp.eq.s32.totalorder %s36_s25, 0 }
   0xc   : > { %p1648_p8 = scmp.lt.s32.totalorder %s1886_s20, 4  ;;  %s189_s28 = sand.u32 1, %s1874_s17  }
   0xd   : > { %p1964_p7 = por %p53_p5, %p52_p4  ;;  %s1497_s29 = sshll.u32 %s1882_s19, 12 }
   0xe   : > { %s1970_s27 = scalar_select %p37_p6, %s1874_s17, %s39_s23  }
   0xf   : > { %s1443_s30 = sshll.u32 %s189_s28, 8  ;;  %s1977_s7 = scalar_lea.hbm %s2613_s0, %s1497_s29 }
  0x10   : > { %s193_s8 = scalar_lea.vmem [#allocation2], %s1443_s30  ;;  %p1981_p9 = pnand %p1648_p8, %p1955_p3 }
  0x11   : > { %s200_s9 = sshll.u32 %s193_s8, 4  ;;  %s1987_s11 = scalar_lea.sflag [#allocation3], %s189_s28  ;;  %s1985_s9 = int_to_ptr.vmem [resolvable:$true] %s200_s9 }
  0x12   : > { %s1746_s12 = scalar_lea.hbm %s1977_s7, 4096  ;;  %p1748_p11 = pneg %p1981_p9 }
  0x13   : > { %p1747_p10 = scmp.ne.s32.totalorder %s1977_s7, %s1746_s12  ;;  %s1751_s15 = scalar_lea.hbm %s2613_s0, 16384 }
  0x14   : > { %p1752_p0 = scmp.lt.u32.totalorder %s1977_s7, %s2613_s0  ;;  %p1753_p1 = scmp.lt.u32.totalorder %s1751_s15, %s1746_s12 }
  0x15   : > { %p1749_p12 = pnand %p1748_p11, %p1747_p10  ;;  %p1755_p3 = scmp.lt.u32.totalorder %s1746_s12, %s1977_s7 }
  0x16   : > { %p1754_p2 = por %p1753_p1, %p1752_p0 }
  0x17   : > { %p1750_p13 = pneg %p1749_p12 }
  0x18   : > { %p1756_p4 = por %p1755_p3, %p1754_p2 }
  0x1a   : > { %p1757_p5 = pnand %p1756_p4, %p1750_p13 }
  0x1c   : > { %1760 = shalt.err (!%p1757_p5)
}
  0x1d   : > { %s1761_s25 = scalar_lea.vmem %s1985_s9, 4096  ;;  %s1888_s28 = smov [#allocation2]  }
  0x1e   : > { %p1762_p6 = scmp.ne.s32.totalorder %s1985_s9, %s1761_s25  ;;  %s1766_s29 = sshll.u32 %s1888_s28, 4  ;;  %s1767_s29 = int_to_ptr.vmem [resolvable:$false] %s1766_s29 }
  0x1f   : > { %s1768_s30 = scalar_lea.vmem %s1767_s29, 8192  ;;  %p1769_p12 = scmp.lt.s32.totalorder %s1985_s9, %s1767_s29 }
  0x20   : > { %p1764_p8 = pnand %p1762_p6, %p1748_p11  ;;  %p1770_p0 = scmp.lt.s32.totalorder %s1768_s30, %s1761_s25 }
  0x22   : > { %p1765_p10 = pneg %p1764_p8  ;;  %p1771_p1 = por %p1770_p0, %p1769_p12 }
  0x24   : > { %p1772_p2 = pnand %p1771_p1, %p1765_p10 }
  0x26   : > { %1775 = shalt.err (!%p1772_p2)
}
  0x27   : > { %s1889_s5 = smov 64   ;;  %s1890_s6 = smov 4  }
  0x28   : > { %1647 = dma.hbm_to_vmem [thread:$0]  (!%p1981_p9), %s1977_s7, 4096, %s1985_s9, %s1987_s11, %s1889_s5, %s1889_s5, %s1890_s6  }
  0x29   : > { %p1446_p11 = scmp.ge.s32.totalorder %s1886_s20, 1  ;;  %p208_p13 = scmp.lt.s32.totalorder %s1886_s20, 5 }
  0x2b   : > { %p209_p3 = pnand %p1446_p11, %p208_p13 }
  0x2c   : > { %s214_s8 = sand.u32 (!%p209_p3), 1, %s1870_s16  }
  0x2d   : > { %212 = sbr.rel (%p209_p3) target bundleno = 489 (0x1e9), region = 28  ;;  %s1447_s12 = sshll.u32 (!%p209_p3), %s214_s8, 8 }
  0x2e   : > { %s215_s13 = scalar_lea.sflag (!%p209_p3), [#allocation3], %s214_s8  ;;  %s2018_s14 = scalar_lea.vmem (!%p209_p3), [#allocation2], %s1447_s12 }
  0x34   : > { %1853 = dma.done.wait (%p1964_p7), %s215_s13, 4096  }
  0x35   : > { %1855 = vsyncadd (%p1964_p7), %s215_s13, 4294963200  ;;  %s1448_s15 = sshll.u32 %s1878_s18, 6  ;;  %p1450_p9 = scmp.ne.s32.totalorder %s1878_s18, 0 }
  0x36   : > { %p256_p4 = scmp.lt.s32.totalorder %s1448_s15, 255  ;;  %vm269_vm0 = vcmask (!%p1450_p9), 516096   ;;  %v1891_v0 = vmov (!%p1450_p9), 0.0  }
  0x37   : > { %268 = sbr.rel (%p1450_p9) target bundleno = 62 (0x3e), region = 36  ;;  %270 = vst.msk [vmem:[#allocation5] sm:$0x1] (!%p1450_p9), %vm269_vm0, %v1891_v0  ;;  %271 = vst.msk [vmem:[#allocation6] sm:$0x1] (!%p1450_p9), %vm269_vm0, %v1891_v0 }
  0x38   : > { %s2630_s15 = smov (!%p256_p4, %s1448_s15), 255 }
  0x39   : > { %s1449_s7 = sshll.u32 %s2630_s15, 3 }
  0x3a   : > { %s2028_s11 = scalar_lea.vmem %s2615_s2, %s1449_s7 }
  0x3e PF: > { %v1706_v1 = vld [vmem:[%s2614_s1] sm:$0xff]   ;;  %v1707_v2 = vld [vmem:[%s2614_s1 + $0x8] sm:$0xff]   ;;  %v1708_v3 = vld [vmem:[%s2614_s1 + $0x10] sm:$0xff]   ;;  %vm881_vm1 = vcmask 523264   ;;  %vm1081_vm2 = vcmask 516096   ;;  %p2537_p7 = scmp.eq.s32.totalorder %s1438_s21, 3 }
  0x3f   : > { %1538 = vmatprep.subr.bf16.mxu0 %v1706_v1  ;;  %1618 = vmatprep.subr.bf16.mxu1 %v1706_v1  ;;  %v1709_v4 = vld [vmem:[%s2614_s1 + $0x18] sm:$0xff]   ;;  %v1714_v5 = vld [vmem:[%s2018_s14] sm:$0xff]   ;;  %v1711_v7 = vld [vmem:[%s2614_s1 + $0x28] sm:$0xff]   ;;  %s1893_s26 = smov [#allocation6]  }
  0x40   : > { %1539 = vmatpush3.bf16.msra.mxu0 %v1706_v1  ;;  %1626 = vmatpush3.bf16.msra.mxu1 %v1706_v1  ;;  %v1710_v6 = vld [vmem:[%s2614_s1 + $0x20] sm:$0xff]   ;;  %v1712_v8 = vld [vmem:[%s2614_s1 + $0x30] sm:$0xff]   ;;  %v1713_v9 = vld [vmem:[%s2614_s1 + $0x38] sm:$0xff]   ;;  %s1317_s23 = sshll.u32 %s1893_s26, 4  ;;  %s2542_s23 = int_to_ptr.vmem [resolvable:$true] %s1317_s23 }
  0x41   : > { %1540 = vmatprep.subr.bf16.mxu0 %v1707_v2  ;;  %1619 = vmatprep.subr.bf16.mxu1 %v1707_v2  ;;  %v1730_v10 = vld [vmem:[%s2018_s14 + $0x80] sm:$0xff]   ;;  %v1715_v11 = vld [vmem:[%s2018_s14 + $0x8] sm:$0xff]   ;;  %v1716_v12 = vld [vmem:[%s2018_s14 + $0x10] sm:$0xff]  }
  0x42   : > { %1554 = vmatprep.mubr.bf16.mxu0 %v1714_v5  ;;  %1586 = vmatprep.mubr.bf16.mxu1 %v1730_v10  ;;  %v1731_v13 = vld [vmem:[%s2018_s14 + $0x88] sm:$0xff]   ;;  %v1732_v14 = vld [vmem:[%s2018_s14 + $0x90] sm:$0xff]   ;;  %v1717_v15 = vld [vmem:[%s2018_s14 + $0x18] sm:$0xff]  }
  0x43   : > { %v1718_v16 = vld [vmem:[%s2018_s14 + $0x20] sm:$0xff]   ;;  %v1733_v17 = vld [vmem:[%s2018_s14 + $0x98] sm:$0xff]   ;;  %v1719_v19 = vld [vmem:[%s2018_s14 + $0x28] sm:$0xff]  }
  0x44   : > { %1541 = vmatpush3.bf16.msra.mxu0 %v1707_v2  ;;  %1627 = vmatpush3.bf16.msra.mxu1 %v1707_v2  ;;  %v1734_v18 = vld [vmem:[%s2018_s14 + $0xa0] sm:$0xff]   ;;  %v1735_v20 = vld [vmem:[%s2018_s14 + $0xa8] sm:$0xff]   ;;  %v1720_v21 = vld [vmem:[%s2018_s14 + $0x30] sm:$0xff]  }
  0x45   : > { %1542 = vmatprep.subr.bf16.mxu0 %v1708_v3  ;;  %1620 = vmatprep.subr.bf16.mxu1 %v1708_v3  ;;  %v1736_v22 = vld [vmem:[%s2018_s14 + $0xb0] sm:$0xff]   ;;  %v1721_v23 = vld [vmem:[%s2018_s14 + $0x38] sm:$0xff]   ;;  %v1722_v25 = vld [vmem:[%s2018_s14 + $0x40] sm:$0xff]  }
  0x46   : > { %v1737_v24 = vld [vmem:[%s2018_s14 + $0xb8] sm:$0xff]   ;;  %v1738_v26 = vld [vmem:[%s2018_s14 + $0xc0] sm:$0xff]   ;;  %v1723_v27 = vld [vmem:[%s2018_s14 + $0x48] sm:$0xff]  }
  0x47   : > { %v1739_v28 = vld [vmem:[%s2018_s14 + $0xc8] sm:$0xff]   ;;  %v1724_v29 = vld [vmem:[%s2018_s14 + $0x50] sm:$0xff]   ;;  %v1725_v31 = vld [vmem:[%s2018_s14 + $0x58] sm:$0xff]  }
  0x48   : > { %1543 = vmatpush3.bf16.msra.mxu0 %v1708_v3  ;;  %1628 = vmatpush3.bf16.msra.mxu1 %v1708_v3  ;;  %v1740_v30 = vld [vmem:[%s2018_s14 + $0xd0] sm:$0xff]   ;;  %v1741_v32 = vld [vmem:[%s2018_s14 + $0xd8] sm:$0xff]   ;;  %v1726_v33 = vld [vmem:[%s2018_s14 + $0x60] sm:$0xff]  }
  0x49   : > { %1544 = vmatprep.subr.bf16.mxu0 %v1709_v4  ;;  %1621 = vmatprep.subr.bf16.mxu1 %v1709_v4  ;;  %v1742_v34 = vld [vmem:[%s2018_s14 + $0xe0] sm:$0xff]   ;;  %v1727_v35 = vld [vmem:[%s2018_s14 + $0x68] sm:$0xff]   ;;  %v1728_v37 = vld [vmem:[%s2018_s14 + $0x70] sm:$0xff]  }
  0x4a   : > { %v1743_v36 = vld [vmem:[%s2018_s14 + $0xe8] sm:$0xff]   ;;  %v1744_v38 = vld [vmem:[%s2018_s14 + $0xf0] sm:$0xff]   ;;  %v1729_v39 = vld [vmem:[%s2018_s14 + $0x78] sm:$0xff]  }
  0x4b   : > { %v1745_v40 = vld [vmem:[%s2018_s14 + $0xf8] sm:$0xff]   ;;  %s1892_s14 = smov [#allocation5]  }
  0x4c   : > { %1545 = vmatpush3.bf16.msra.mxu0 %v1709_v4  ;;  %1629 = vmatpush3.bf16.msra.mxu1 %v1709_v4  ;;  %s1304_s10 = sshll.u32 %s1892_s14, 4  ;;  %s1305_s10 = int_to_ptr.vmem [resolvable:$true] %s1304_s10 }
  0x4d   : > { %1546 = vmatprep.subr.bf16.mxu0 %v1710_v6  ;;  %1622 = vmatprep.subr.bf16.mxu1 %v1710_v6  ;;  %s1776_s24 = scalar_lea.vmem %s1305_s10, 16  ;;  %s1782_s21 = scalar_lea.vmem %s1305_s10, 32 }
  0x4e   : > { %p1777_p5 = scmp.ne.s32.totalorder %s1305_s10, %s1776_s24  ;;  %p1783_p10 = scmp.lt.s32.totalorder %s1305_s10, %s1305_s10 }
  0x4f   : > { %p1784_p12 = scmp.lt.s32.totalorder %s1782_s21, %s1776_s24 }
  0x50   : > { %1547 = vmatpush3.bf16.msra.mxu0 %v1710_v6  ;;  %1630 = vmatpush3.bf16.msra.mxu1 %v1710_v6  ;;  %p1778_p6 = pnand %p1777_p5, %p2537_p7 }
  0x51   : > { %1548 = vmatprep.subr.bf16.mxu0 %v1711_v7  ;;  %1623 = vmatprep.subr.bf16.mxu1 %v1711_v7  ;;  %p1785_p0 = por %p1784_p12, %p1783_p10 }
  0x52   : > { %p1779_p8 = pneg %p1778_p6 }
  0x54   : > { %1549 = vmatpush3.bf16.msra.mxu0 %v1711_v7  ;;  %1631 = vmatpush3.bf16.msra.mxu1 %v1711_v7  ;;  %p1786_p1 = pnand %p1785_p0, %p1779_p8 }
  0x55   : > { %1550 = vmatprep.subr.bf16.mxu0 %v1712_v8  ;;  %1624 = vmatprep.subr.bf16.mxu1 %v1712_v8 }
  0x58   : > { %1551 = vmatpush3.bf16.msra.mxu0 %v1712_v8  ;;  %1632 = vmatpush3.bf16.msra.mxu1 %v1712_v8 }
  0x59   : > { %1552 = vmatprep.subr.bf16.mxu0 %v1713_v9  ;;  %1625 = vmatprep.subr.bf16.mxu1 %v1713_v9 }
  0x5c   : > { %1553 = vmatpush3.bf16.msra.mxu0 %v1713_v9  ;;  %1633 = vmatpush3.bf16.msra.mxu1 %v1713_v9 }
  0x5f   : > { %1555 = vmatmul.mubr.bf16.vlgmr.msra.gmra.mrb[0].mxu0 %v1715_v11  ;;  %1587 = vmatmul.mubr.bf16.vlgmr.msra.gmra.mrb[0].mxu1 %v1731_v13 }
  0x60   : > { %1558 = vmatprep.mubr.bf16.mxu0 %v1716_v12  ;;  %1590 = vmatprep.mubr.bf16.mxu1 %v1732_v14 }
  0x67   : > { %1559 = vmatmul.mubr.bf16.gmra.mrb[4].mxu0 %v1717_v15  ;;  %1591 = vmatmul.mubr.bf16.gmra.mrb[4].mxu1 %v1733_v17 }
  0x68   : > { %1562 = vmatprep.mubr.bf16.mxu0 %v1718_v16  ;;  %1594 = vmatprep.mubr.bf16.mxu1 %v1734_v18 }
  0x6f   : > { %1563 = vmatmul.mubr.bf16.gmra.mrb[8].mxu0 %v1719_v19  ;;  %1595 = vmatmul.mubr.bf16.gmra.mrb[8].mxu1 %v1735_v20 }
  0x70   : > { %1566 = vmatprep.mubr.bf16.mxu0 %v1720_v21  ;;  %1598 = vmatprep.mubr.bf16.mxu1 %v1736_v22 }
  0x77   : > { %1567 = vmatmul.mubr.bf16.gmra.mrb[12].mxu0 %v1721_v23  ;;  %1599 = vmatmul.mubr.bf16.gmra.mrb[12].mxu1 %v1737_v24 }
  0x78   : > { %1570 = vmatprep.mubr.bf16.mxu0 %v1722_v25  ;;  %1602 = vmatprep.mubr.bf16.mxu1 %v1738_v26 }
  0x7f   : > { %1571 = vmatmul.mubr.bf16.gmra.mrb[16].mxu0 %v1723_v27  ;;  %1603 = vmatmul.mubr.bf16.gmra.mrb[16].mxu1 %v1739_v28 }
  0x80   : > { %1574 = vmatprep.mubr.bf16.mxu0 %v1724_v29  ;;  %1606 = vmatprep.mubr.bf16.mxu1 %v1740_v30 }
  0x87   : > { %1575 = vmatmul.mubr.bf16.gmra.mrb[20].mxu0 %v1725_v31  ;;  %1607 = vmatmul.mubr.bf16.gmra.mrb[20].mxu1 %v1741_v32 }
  0x88   : > { %1578 = vmatprep.mubr.bf16.mxu0 %v1726_v33  ;;  %1610 = vmatprep.mubr.bf16.mxu1 %v1742_v34 }
  0x8f   : > { %1579 = vmatmul.mubr.bf16.gmra.mrb[24].mxu0 %v1727_v35  ;;  %1611 = vmatmul.mubr.bf16.gmra.mrb[24].mxu1 %v1743_v36 }
  0x90   : > { %1582 = vmatprep.mubr.bf16.mxu0 %v1728_v37  ;;  %1614 = vmatprep.mubr.bf16.mxu1 %v1744_v38 }
  0x97   : > { %1583 = vmatmul.mubr.bf16.gmra.mrb[28].mxu0 %v1729_v39  ;;  %1615 = vmatmul.mubr.bf16.gmra.mrb[28].mxu1 %v1745_v40 }
 0x132   : > { %v1556_v41 = vpop.f32.mrb[0].mxu0  ;;  %v2087_v42 = vpop.f32.mrb[0].mxu1 }
 0x133   : > { %884 = vst.msk [vmem:[%s2028_s11 + $0x10] sm:$0xff] %vm881_vm1, %v1556_v41  ;;  %v626_v43 = vpop.f32.mrb[1].mxu0  ;;  %916 = vst.msk [vmem:[%s2028_s11 + $0x110] sm:$0xff] %vm881_vm1, %v2087_v42  ;;  %v2094_v44 = vpop.f32.mrb[1].mxu1  ;;  %v1086_v50 = vmul.f32 %v1556_v41, %v1556_v41  ;;  %v950_v55 = vsel %vm881_vm1, %v1556_v41, 0.0 }
 0x134   : > { %882 = vst.msk [vmem:[%s2028_s11] sm:$0xff] %vm881_vm1, %v626_v43  ;;  %v1084_v45 = vmul.f32 %v626_v43, %v626_v43  ;;  %v1557_v46 = vpop.f32.mrb[2].mxu0  ;;  %914 = vst.msk [vmem:[%s2028_s11 + $0x100] sm:$0xff] %vm881_vm1, %v2094_v44  ;;  %v2101_v47 = vpop.f32.mrb[2].mxu1  ;;  %v947_v51 = vsel %vm881_vm1, %v626_v43, 0.0 }
 0x135   : > { %885 = vst.msk [vmem:[%s2028_s11 + $0x18] sm:$0xff] %vm881_vm1, %v1557_v46  ;;  %v629_v48 = vpop.f32.mrb[3].mxu0  ;;  %917 = vst.msk [vmem:[%s2028_s11 + $0x118] sm:$0xff] %vm881_vm1, %v2101_v47  ;;  %v2108_v49 = vpop.f32.mrb[3].mxu1  ;;  %v1087_v57 = vmul.f32 %v1557_v46, %v1557_v46  ;;  %v1151_v61 = vsel %vm881_vm1, %v1086_v50, 0.0  ;;  %v952_v62 = vsel %vm881_vm1, %v1557_v46, 0.0 }
 0x136   : > { %883 = vst.msk [vmem:[%s2028_s11 + $0x8] sm:$0xff] %vm881_vm1, %v629_v48  ;;  %v948_v52 = vsel %vm881_vm1, %v629_v48, 0.0  ;;  %v1085_v53 = vmul.f32 %v629_v48, %v629_v48  ;;  %915 = vst.msk [vmem:[%s2028_s11 + $0x108] sm:$0xff] %vm881_vm1, %v2108_v49  ;;  %v1148_v56 = vsel %vm881_vm1, %v1084_v45, 0.0 }
 0x137   : > { %v949_v54 = vadd.f32 %v948_v52, %v947_v51  ;;  %v1153_v5 = vsel %vm881_vm1, %v1087_v57, 0.0 }
 0x138   : > { %v1149_v58 = vsel %vm881_vm1, %v1085_v53, 0.0 }
 0x139   : > { %v951_v59 = vadd.f32 %v950_v55, %v949_v54  ;;  %v1150_v60 = vadd.f32 %v1149_v58, %v1148_v56 }
 0x13a   : > { %v1560_v63 = vpop.f32.mrb[4].mxu0  ;;  %v2122_v0 = vpop.f32.mrb[4].mxu1 }
 0x13b   : > { %v1152_v1 = vadd.f32 %v1151_v61, %v1150_v60  ;;  %888 = vst.msk [vmem:[%s2028_s11 + $0x30] sm:$0xff] %vm881_vm1, %v1560_v63  ;;  %v642_v2 = vpop.f32.mrb[5].mxu0  ;;  %v953_v3 = vadd.f32 %v952_v62, %v951_v59  ;;  %920 = vst.msk [vmem:[%s2028_s11 + $0x130] sm:$0xff] %vm881_vm1, %v2122_v0  ;;  %v2129_v4 = vpop.f32.mrb[5].mxu1  ;;  %v1090_v14 = vmul.f32 %v1560_v63, %v1560_v63  ;;  %v958_v20 = vsel %vm881_vm1, %v1560_v63, 0.0 }
 0x13c   : > { %886 = vst.msk [vmem:[%s2028_s11 + $0x20] sm:$0xff] %vm881_vm1, %v642_v2  ;;  %v954_v6 = vsel %vm881_vm1, %v642_v2, 0.0  ;;  %v1088_v7 = vmul.f32 %v642_v2, %v642_v2  ;;  %v1561_v8 = vpop.f32.mrb[6].mxu0  ;;  %918 = vst.msk [vmem:[%s2028_s11 + $0x120] sm:$0xff] %vm881_vm1, %v2129_v4  ;;  %v2138_v9 = vpop.f32.mrb[6].mxu1 }
 0x13d   : > { %v955_v10 = vadd.f32 %v954_v6, %v953_v3  ;;  %v1154_v11 = vadd.f32 %v1153_v5, %v1152_v1  ;;  %889 = vst.msk [vmem:[%s2028_s11 + $0x38] sm:$0xff] %vm881_vm1, %v1561_v8  ;;  %v645_v12 = vpop.f32.mrb[7].mxu0  ;;  %921 = vst.msk [vmem:[%s2028_s11 + $0x138] sm:$0xff] %vm881_vm1, %v2138_v9  ;;  %v2145_v13 = vpop.f32.mrb[7].mxu1  ;;  %v1091_v21 = vmul.f32 %v1561_v8, %v1561_v8  ;;  %v1159_v25 = vsel %vm881_vm1, %v1090_v14, 0.0 }
 0x13e   : > { %v1155_v15 = vsel %vm881_vm1, %v1088_v7, 0.0  ;;  %887 = vst.msk [vmem:[%s2028_s11 + $0x28] sm:$0xff] %vm881_vm1, %v645_v12  ;;  %v956_v16 = vsel %vm881_vm1, %v645_v12, 0.0  ;;  %v1089_v17 = vmul.f32 %v645_v12, %v645_v12  ;;  %919 = vst.msk [vmem:[%s2028_s11 + $0x128] sm:$0xff] %vm881_vm1, %v2145_v13  ;;  %v960_v26 = vsel %vm881_vm1, %v1561_v8, 0.0 }
 0x13f   : > { %v1156_v18 = vadd.f32 %v1155_v15, %v1154_v11  ;;  %v957_v19 = vadd.f32 %v956_v16, %v955_v10  ;;  %v1161_v33 = vsel %vm881_vm1, %v1091_v21, 0.0 }
 0x140   : > { %v1157_v22 = vsel %vm881_vm1, %v1089_v17, 0.0 }
 0x141   : > { %v959_v23 = vadd.f32 %v958_v20, %v957_v19  ;;  %v1158_v24 = vadd.f32 %v1157_v22, %v1156_v18 }
 0x142   : > { %v1564_v27 = vpop.f32.mrb[8].mxu0  ;;  %v2158_v28 = vpop.f32.mrb[8].mxu1 }
 0x143   : > { %v1160_v29 = vadd.f32 %v1159_v25, %v1158_v24  ;;  %892 = vst.msk [vmem:[%s2028_s11 + $0x50] sm:$0xff] %vm881_vm1, %v1564_v27  ;;  %v658_v30 = vpop.f32.mrb[9].mxu0  ;;  %v961_v31 = vadd.f32 %v960_v26, %v959_v23  ;;  %924 = vst.msk [vmem:[%s2028_s11 + $0x150] sm:$0xff] %vm881_vm1, %v2158_v28  ;;  %v2165_v32 = vpop.f32.mrb[9].mxu1  ;;  %v1094_v43 = vmul.f32 %v1564_v27, %v1564_v27  ;;  %v966_v52 = vsel %vm881_vm1, %v1564_v27, 0.0 }
 0x144   : > { %890 = vst.msk [vmem:[%s2028_s11 + $0x40] sm:$0xff] %vm881_vm1, %v658_v30  ;;  %v962_v34 = vsel %vm881_vm1, %v658_v30, 0.0  ;;  %v1092_v35 = vmul.f32 %v658_v30, %v658_v30  ;;  %v1565_v36 = vpop.f32.mrb[10].mxu0  ;;  %922 = vst.msk [vmem:[%s2028_s11 + $0x140] sm:$0xff] %vm881_vm1, %v2165_v32  ;;  %v2174_v37 = vpop.f32.mrb[10].mxu1 }
 0x145   : > { %v963_v38 = vadd.f32 %v962_v34, %v961_v31  ;;  %v1162_v39 = vadd.f32 %v1161_v33, %v1160_v29  ;;  %893 = vst.msk [vmem:[%s2028_s11 + $0x58] sm:$0xff] %vm881_vm1, %v1565_v36  ;;  %v661_v40 = vpop.f32.mrb[11].mxu0  ;;  %925 = vst.msk [vmem:[%s2028_s11 + $0x158] sm:$0xff] %vm881_vm1, %v2174_v37  ;;  %v2181_v41 = vpop.f32.mrb[11].mxu1  ;;  %v1095_v53 = vmul.f32 %v1565_v36, %v1565_v36  ;;  %v1167_v57 = vsel %vm881_vm1, %v1094_v43, 0.0 }
 0x146   : > { %v1163_v45 = vsel %vm881_vm1, %v1092_v35, 0.0  ;;  %891 = vst.msk [vmem:[%s2028_s11 + $0x48] sm:$0xff] %vm881_vm1, %v661_v40  ;;  %v964_v46 = vsel %vm881_vm1, %v661_v40, 0.0  ;;  %v1093_v48 = vmul.f32 %v661_v40, %v661_v40  ;;  %923 = vst.msk [vmem:[%s2028_s11 + $0x148] sm:$0xff] %vm881_vm1, %v2181_v41  ;;  %v968_v58 = vsel %vm881_vm1, %v1565_v36, 0.0 }
 0x147   : > { %v1164_v50 = vadd.f32 %v1163_v45, %v1162_v39  ;;  %v965_v51 = vadd.f32 %v964_v46, %v963_v38  ;;  %v1169_v2 = vsel %vm881_vm1, %v1095_v53, 0.0 }
 0x148   : > { %v1165_v54 = vsel %vm881_vm1, %v1093_v48, 0.0 }
 0x149   : > { %v967_v55 = vadd.f32 %v966_v52, %v965_v51  ;;  %v1166_v56 = vadd.f32 %v1165_v54, %v1164_v50 }
 0x14a   : > { %v1568_v59 = vpop.f32.mrb[12].mxu0  ;;  %v2194_v60 = vpop.f32.mrb[12].mxu1 }
 0x14b   : > { %v1168_v61 = vadd.f32 %v1167_v57, %v1166_v56  ;;  %896 = vst.msk [vmem:[%s2028_s11 + $0x70] sm:$0xff] %vm881_vm1, %v1568_v59  ;;  %v674_v62 = vpop.f32.mrb[13].mxu0  ;;  %v969_v63 = vadd.f32 %v968_v58, %v967_v55  ;;  %928 = vst.msk [vmem:[%s2028_s11 + $0x170] sm:$0xff] %vm881_vm1, %v2194_v60  ;;  %v2201_v1 = vpop.f32.mrb[13].mxu1  ;;  %v1098_v14 = vmul.f32 %v1568_v59, %v1568_v59  ;;  %v974_v20 = vsel %vm881_vm1, %v1568_v59, 0.0 }
 0x14c   : > { %894 = vst.msk [vmem:[%s2028_s11 + $0x60] sm:$0xff] %vm881_vm1, %v674_v62  ;;  %v970_v3 = vsel %vm881_vm1, %v674_v62, 0.0  ;;  %v1096_v5 = vmul.f32 %v674_v62, %v674_v62  ;;  %v1569_v6 = vpop.f32.mrb[14].mxu0  ;;  %926 = vst.msk [vmem:[%s2028_s11 + $0x160] sm:$0xff] %vm881_vm1, %v2201_v1  ;;  %v2210_v7 = vpop.f32.mrb[14].mxu1 }
 0x14d   : > { %v971_v8 = vadd.f32 %v970_v3, %v969_v63  ;;  %v1170_v10 = vadd.f32 %v1169_v2, %v1168_v61  ;;  %897 = vst.msk [vmem:[%s2028_s11 + $0x78] sm:$0xff] %vm881_vm1, %v1569_v6  ;;  %v677_v11 = vpop.f32.mrb[15].mxu0  ;;  %929 = vst.msk [vmem:[%s2028_s11 + $0x178] sm:$0xff] %vm881_vm1, %v2210_v7  ;;  %v2217_v12 = vpop.f32.mrb[15].mxu1  ;;  %v1099_v21 = vmul.f32 %v1569_v6, %v1569_v6  ;;  %v1175_v25 = vsel %vm881_vm1, %v1098_v14, 0.0 }
 0x14e   : > { %v1171_v15 = vsel %vm881_vm1, %v1096_v5, 0.0  ;;  %895 = vst.msk [vmem:[%s2028_s11 + $0x68] sm:$0xff] %vm881_vm1, %v677_v11  ;;  %v972_v16 = vsel %vm881_vm1, %v677_v11, 0.0  ;;  %v1097_v17 = vmul.f32 %v677_v11, %v677_v11  ;;  %927 = vst.msk [vmem:[%s2028_s11 + $0x168] sm:$0xff] %vm881_vm1, %v2217_v12  ;;  %v976_v26 = vsel %vm881_vm1, %v1569_v6, 0.0 }
 0x14f   : > { %v1172_v18 = vadd.f32 %v1171_v15, %v1170_v10  ;;  %v973_v19 = vadd.f32 %v972_v16, %v971_v8  ;;  %v1177_v35 = vsel %vm881_vm1, %v1099_v21, 0.0 }
 0x150   : > { %v1173_v22 = vsel %vm881_vm1, %v1097_v17, 0.0 }
 0x151   : > { %v975_v23 = vadd.f32 %v974_v20, %v973_v19  ;;  %v1174_v24 = vadd.f32 %v1173_v22, %v1172_v18 }
 0x152   : > { %v1572_v27 = vpop.f32.mrb[16].mxu0  ;;  %v2230_v29 = vpop.f32.mrb[16].mxu1 }
 0x153   : > { %v1176_v30 = vadd.f32 %v1175_v25, %v1174_v24  ;;  %900 = vst.msk [vmem:[%s2028_s11 + $0x90] sm:$0xff] %vm881_vm1, %v1572_v27  ;;  %v690_v31 = vpop.f32.mrb[17].mxu0  ;;  %v977_v33 = vadd.f32 %v976_v26, %v975_v23  ;;  %932 = vst.msk [vmem:[%s2028_s11 + $0x190] sm:$0xff] %vm881_vm1, %v2230_v29  ;;  %v2237_v34 = vpop.f32.mrb[17].mxu1  ;;  %v1102_v50 = vmul.f32 %v1572_v27, %v1572_v27  ;;  %v982_v56 = vsel %vm881_vm1, %v1572_v27, 0.0 }
 0x154   : > { %898 = vst.msk [vmem:[%s2028_s11 + $0x80] sm:$0xff] %vm881_vm1, %v690_v31  ;;  %v978_v36 = vsel %vm881_vm1, %v690_v31, 0.0  ;;  %v1100_v38 = vmul.f32 %v690_v31, %v690_v31  ;;  %v1573_v39 = vpop.f32.mrb[18].mxu0  ;;  %930 = vst.msk [vmem:[%s2028_s11 + $0x180] sm:$0xff] %vm881_vm1, %v2237_v34  ;;  %v2246_v40 = vpop.f32.mrb[18].mxu1 }
 0x155   : > { %v979_v43 = vadd.f32 %v978_v36, %v977_v33  ;;  %v1178_v45 = vadd.f32 %v1177_v35, %v1176_v30  ;;  %901 = vst.msk [vmem:[%s2028_s11 + $0x98] sm:$0xff] %vm881_vm1, %v1573_v39  ;;  %v693_v46 = vpop.f32.mrb[19].mxu0  ;;  %933 = vst.msk [vmem:[%s2028_s11 + $0x198] sm:$0xff] %vm881_vm1, %v2246_v40  ;;  %v2253_v48 = vpop.f32.mrb[19].mxu1  ;;  %v1103_v57 = vmul.f32 %v1573_v39, %v1573_v39  ;;  %v1183_v62 = vsel %vm881_vm1, %v1102_v50, 0.0 }
 0x156   : > { %v1179_v51 = vsel %vm881_vm1, %v1100_v38, 0.0  ;;  %899 = vst.msk [vmem:[%s2028_s11 + $0x88] sm:$0xff] %vm881_vm1, %v693_v46  ;;  %v980_v52 = vsel %vm881_vm1, %v693_v46, 0.0  ;;  %v1101_v53 = vmul.f32 %v693_v46, %v693_v46  ;;  %931 = vst.msk [vmem:[%s2028_s11 + $0x188] sm:$0xff] %vm881_vm1, %v2253_v48  ;;  %v984_v63 = vsel %vm881_vm1, %v1573_v39, 0.0 }
 0x157   : > { %v1180_v54 = vadd.f32 %v1179_v51, %v1178_v45  ;;  %v981_v55 = vadd.f32 %v980_v52, %v979_v43  ;;  %v1185_v11 = vsel %vm881_vm1, %v1103_v57, 0.0 }
 0x158   : > { %v1181_v58 = vsel %vm881_vm1, %v1101_v53, 0.0 }
 0x159   : > { %v983_v59 = vadd.f32 %v982_v56, %v981_v55  ;;  %v1182_v61 = vadd.f32 %v1181_v58, %v1180_v54 }
 0x15a   : > { %v1576_v2 = vpop.f32.mrb[20].mxu0  ;;  %v2266_v3 = vpop.f32.mrb[20].mxu1 }
 0x15b   : > { %v1184_v5 = vadd.f32 %v1183_v62, %v1182_v61  ;;  %904 = vst.msk [vmem:[%s2028_s11 + $0xb0] sm:$0xff] %vm881_vm1, %v1576_v2  ;;  %v706_v6 = vpop.f32.mrb[21].mxu0  ;;  %v985_v8 = vadd.f32 %v984_v63, %v983_v59  ;;  %936 = vst.msk [vmem:[%s2028_s11 + $0x1b0] sm:$0xff] %vm881_vm1, %v2266_v3  ;;  %v2273_v10 = vpop.f32.mrb[21].mxu1  ;;  %v1106_v22 = vmul.f32 %v1576_v2, %v1576_v2  ;;  %v990_v30 = vsel %vm881_vm1, %v1576_v2, 0.0 }
 0x15c   : > { %902 = vst.msk [vmem:[%s2028_s11 + $0xa0] sm:$0xff] %vm881_vm1, %v706_v6  ;;  %v986_v14 = vsel %vm881_vm1, %v706_v6, 0.0  ;;  %v1104_v15 = vmul.f32 %v706_v6, %v706_v6  ;;  %v1577_v16 = vpop.f32.mrb[22].mxu0  ;;  %934 = vst.msk [vmem:[%s2028_s11 + $0x1a0] sm:$0xff] %vm881_vm1, %v2273_v10  ;;  %v2282_v17 = vpop.f32.mrb[22].mxu1 }
 0x15d   : > { %v987_v18 = vadd.f32 %v986_v14, %v985_v8  ;;  %v1186_v19 = vadd.f32 %v1185_v11, %v1184_v5  ;;  %905 = vst.msk [vmem:[%s2028_s11 + $0xb8] sm:$0xff] %vm881_vm1, %v1577_v16  ;;  %v709_v20 = vpop.f32.mrb[23].mxu0  ;;  %937 = vst.msk [vmem:[%s2028_s11 + $0x1b8] sm:$0xff] %vm881_vm1, %v2282_v17  ;;  %v2289_v21 = vpop.f32.mrb[23].mxu1  ;;  %v1107_v31 = vmul.f32 %v1577_v16, %v1577_v16  ;;  %v1191_v38 = vsel %vm881_vm1, %v1106_v22, 0.0 }
 0x15e   : > { %v1187_v23 = vsel %vm881_vm1, %v1104_v15, 0.0  ;;  %903 = vst.msk [vmem:[%s2028_s11 + $0xa8] sm:$0xff] %vm881_vm1, %v709_v20  ;;  %v988_v24 = vsel %vm881_vm1, %v709_v20, 0.0  ;;  %v1105_v25 = vmul.f32 %v709_v20, %v709_v20  ;;  %935 = vst.msk [vmem:[%s2028_s11 + $0x1a8] sm:$0xff] %vm881_vm1, %v2289_v21  ;;  %v992_v39 = vsel %vm881_vm1, %v1577_v16, 0.0 }
 0x15f   : > { %v1188_v26 = vadd.f32 %v1187_v23, %v1186_v19  ;;  %v989_v27 = vadd.f32 %v988_v24, %v987_v18  ;;  %v1193_v53 = vsel %vm881_vm1, %v1107_v31, 0.0 }
 0x160   : > { %v1189_v33 = vsel %vm881_vm1, %v1105_v25, 0.0 }
 0x161   : > { %v991_v35 = vadd.f32 %v990_v30, %v989_v27  ;;  %v1190_v36 = vadd.f32 %v1189_v33, %v1188_v26 }
 0x162   : > { %v1580_v43 = vpop.f32.mrb[24].mxu0  ;;  %v2302_v45 = vpop.f32.mrb[24].mxu1 }
 0x163   : > { %v1192_v46 = vadd.f32 %v1191_v38, %v1190_v36  ;;  %908 = vst.msk [vmem:[%s2028_s11 + $0xd0] sm:$0xff] %vm881_vm1, %v1580_v43  ;;  %v722_v50 = vpop.f32.mrb[25].mxu0  ;;  %v993_v51 = vadd.f32 %v992_v39, %v991_v35  ;;  %940 = vst.msk [vmem:[%s2028_s11 + $0x1d0] sm:$0xff] %vm881_vm1, %v2302_v45  ;;  %v2309_v52 = vpop.f32.mrb[25].mxu1  ;;  %v1110_v63 = vmul.f32 %v1580_v43, %v1580_v43  ;;  %v998_v14 = vsel %vm881_vm1, %v1580_v43, 0.0 }
 0x164   : > { %906 = vst.msk [vmem:[%s2028_s11 + $0xc0] sm:$0xff] %vm881_vm1, %v722_v50  ;;  %v994_v54 = vsel %vm881_vm1, %v722_v50, 0.0  ;;  %v1108_v55 = vmul.f32 %v722_v50, %v722_v50  ;;  %v1581_v56 = vpop.f32.mrb[26].mxu0  ;;  %938 = vst.msk [vmem:[%s2028_s11 + $0x1c0] sm:$0xff] %vm881_vm1, %v2309_v52  ;;  %v2318_v57 = vpop.f32.mrb[26].mxu1 }
 0x165   : > { %v995_v58 = vadd.f32 %v994_v54, %v993_v51  ;;  %v1194_v59 = vadd.f32 %v1193_v53, %v1192_v46  ;;  %909 = vst.msk [vmem:[%s2028_s11 + $0xd8] sm:$0xff] %vm881_vm1, %v1581_v56  ;;  %v725_v61 = vpop.f32.mrb[27].mxu0  ;;  %941 = vst.msk [vmem:[%s2028_s11 + $0x1d8] sm:$0xff] %vm881_vm1, %v2318_v57  ;;  %v2325_v62 = vpop.f32.mrb[27].mxu1  ;;  %v1111_v15 = vmul.f32 %v1581_v56, %v1581_v56  ;;  %v1199_v20 = vsel %vm881_vm1, %v1110_v63, 0.0 }
 0x166   : > { %v1195_v2 = vsel %vm881_vm1, %v1108_v55, 0.0  ;;  %907 = vst.msk [vmem:[%s2028_s11 + $0xc8] sm:$0xff] %vm881_vm1, %v725_v61  ;;  %v996_v5 = vsel %vm881_vm1, %v725_v61, 0.0  ;;  %v1109_v6 = vmul.f32 %v725_v61, %v725_v61  ;;  %939 = vst.msk [vmem:[%s2028_s11 + $0x1c8] sm:$0xff] %vm881_vm1, %v2325_v62  ;;  %v1000_v22 = vsel %vm881_vm1, %v1581_v56, 0.0 }
 0x167   : > { %v1196_v8 = vadd.f32 %v1195_v2, %v1194_v59  ;;  %v997_v11 = vadd.f32 %v996_v5, %v995_v58  ;;  %v1201_v31 = vsel %vm881_vm1, %v1111_v15, 0.0  ;;  %v1116_v2 = vmul.f32 %v2094_v44, %v2094_v44 }
 0x168   : > { %v1197_v16 = vsel %vm881_vm1, %v1109_v6, 0.0 }
 0x169   : > { %v999_v18 = vadd.f32 %v998_v14, %v997_v11  ;;  %v1198_v19 = vadd.f32 %v1197_v16, %v1196_v8  ;;  %v1010_v14 = vsel %vm881_vm1, %v2094_v44, 0.0  ;;  %v1014_v44 = vsel %vm881_vm1, %v2087_v42, 0.0 }
 0x16a   : > { %v1584_v23 = vpop.f32.mrb[28].mxu0  ;;  %v2338_v24 = vpop.f32.mrb[28].mxu1 }
 0x16b   : > { %v1200_v25 = vadd.f32 %v1199_v20, %v1198_v19  ;;  %912 = vst.msk [vmem:[%s2028_s11 + $0xf0] sm:$0xff] %vm881_vm1, %v1584_v23  ;;  %v738_v26 = vpop.f32.mrb[29].mxu0  ;;  %v1001_v27 = vadd.f32 %v1000_v22, %v999_v18  ;;  %944 = vst.msk [vmem:[%s2028_s11 + $0x1f0] sm:$0xff] %vm881_vm1, %v2338_v24  ;;  %v2345_v30 = vpop.f32.mrb[29].mxu1  ;;  %v1114_v51 = vmul.f32 %v1584_v23, %v1584_v23  ;;  %v1006_v59 = vsel %vm881_vm1, %v1584_v23, 0.0 }
 0x16c   : > { %910 = vst.msk [vmem:[%s2028_s11 + $0xe0] sm:$0xff] %vm881_vm1, %v738_v26  ;;  %v1002_v33 = vsel %vm881_vm1, %v738_v26, 0.0  ;;  %v1112_v35 = vmul.f32 %v738_v26, %v738_v26  ;;  %v1585_v36 = vpop.f32.mrb[30].mxu0  ;;  %942 = vst.msk [vmem:[%s2028_s11 + $0x1e0] sm:$0xff] %vm881_vm1, %v2345_v30  ;;  %v2354_v38 = vpop.f32.mrb[30].mxu1  ;;  %v1211_v19 = vsel %vm881_vm1, %v1116_v2, 0.0  ;;  %v1117_v20 = vmul.f32 %v2108_v49, %v2108_v49 }
 0x16d   : > { %v1003_v39 = vadd.f32 %v1002_v33, %v1001_v27  ;;  %v1202_v43 = vadd.f32 %v1201_v31, %v1200_v25  ;;  %913 = vst.msk [vmem:[%s2028_s11 + $0xf8] sm:$0xff] %vm881_vm1, %v1585_v36  ;;  %v741_v46 = vpop.f32.mrb[31].mxu0  ;;  %945 = vst.msk [vmem:[%s2028_s11 + $0x1f8] sm:$0xff] %vm881_vm1, %v2354_v38  ;;  %v2361_v50 = vpop.f32.mrb[31].mxu1  ;;  %v1115_v61 = vmul.f32 %v1585_v36, %v1585_v36  ;;  %v1207_v8 = vsel %vm881_vm1, %v1114_v51, 0.0 }
 0x16e   : > { %v1203_v53 = vsel %vm881_vm1, %v1112_v35, 0.0  ;;  %911 = vst.msk [vmem:[%s2028_s11 + $0xe8] sm:$0xff] %vm881_vm1, %v741_v46  ;;  %v1004_v54 = vsel %vm881_vm1, %v741_v46, 0.0  ;;  %v1113_v55 = vmul.f32 %v741_v46, %v741_v46  ;;  %943 = vst.msk [vmem:[%s2028_s11 + $0x1e8] sm:$0xff] %vm881_vm1, %v2361_v50  ;;  %v1008_v11 = vsel %vm881_vm1, %v1585_v36, 0.0 }
 0x16f   : > { %v1204_v56 = vadd.f32 %v1203_v53, %v1202_v43  ;;  %v1005_v58 = vadd.f32 %v1004_v54, %v1003_v39  ;;  %v1209_v18 = vsel %vm881_vm1, %v1115_v61, 0.0  ;;  %v1118_v25 = vmul.f32 %v2087_v42, %v2087_v42 }
 0x170   : > { %v1205_v63 = vsel %vm881_vm1, %v1113_v55, 0.0  ;;  %v1012_v26 = vsel %vm881_vm1, %v2108_v49, 0.0  ;;  %v1119_v33 = vmul.f32 %v2101_v47, %v2101_v47  ;;  %v1213_v35 = vsel %vm881_vm1, %v1117_v20, 0.0 }
 0x171   : > { %v1007_v5 = vadd.f32 %v1006_v59, %v1005_v58  ;;  %v1206_v6 = vadd.f32 %v1205_v63, %v1204_v56  ;;  %v1120_v36 = vmul.f32 %v2129_v4, %v2129_v4  ;;  %v1215_v46 = vsel %vm881_vm1, %v1118_v25, 0.0 }
 0x172   : > { %v1016_v49 = vsel %vm881_vm1, %v2101_v47, 0.0  ;;  %v1018_v51 = vsel %vm881_vm1, %v2129_v4, 0.0  ;;  %v1217_v54 = vsel %vm881_vm1, %v1119_v33, 0.0  ;;  %v1121_v56 = vmul.f32 %v2145_v13, %v2145_v13 }
 0x173   : > { %v1208_v15 = vadd.f32 %v1207_v8, %v1206_v6  ;;  %v1009_v16 = vadd.f32 %v1008_v11, %v1007_v5  ;;  %v1219_v55 = vsel %vm881_vm1, %v1120_v36, 0.0  ;;  %v1122_v61 = vmul.f32 %v2122_v0, %v2122_v0 }
 0x174   : > { %v1020_v47 = vsel %vm881_vm1, %v2145_v13, 0.0  ;;  %v1022_v4 = vsel %vm881_vm1, %v2122_v0, 0.0  ;;  %v1123_v5 = vmul.f32 %v2138_v9, %v2138_v9  ;;  %v1221_v6 = vsel %vm881_vm1, %v1121_v56, 0.0 }
 0x175   : > { %v1011_v22 = vadd.f32 %v1010_v14, %v1009_v16  ;;  %v1210_v23 = vadd.f32 %v1209_v18, %v1208_v15  ;;  %v1124_v8 = vmul.f32 %v2165_v32, %v2165_v32  ;;  %v1223_v15 = vsel %vm881_vm1, %v1122_v61, 0.0 }
 0x176   : > { %v1024_v13 = vsel %vm881_vm1, %v2138_v9, 0.0  ;;  %v1026_v16 = vsel %vm881_vm1, %v2165_v32, 0.0  ;;  %v1028_v9 = vsel %vm881_vm1, %v2181_v41, 0.0  ;;  %v1030_v32 = vsel %vm881_vm1, %v2158_v28, 0.0 }
 0x177   : > { %v1212_v27 = vadd.f32 %v1211_v19, %v1210_v23  ;;  %v1013_v31 = vadd.f32 %v1012_v26, %v1011_v22  ;;  %v1225_v19 = vsel %vm881_vm1, %v1123_v5, 0.0  ;;  %v1227_v20 = vsel %vm881_vm1, %v1124_v8, 0.0 }
 0x178   : > { %v1125_v22 = vmul.f32 %v2181_v41, %v2181_v41  ;;  %v1126_v26 = vmul.f32 %v2158_v28, %v2158_v28  ;;  %v1032_v41 = vsel %vm881_vm1, %v2174_v37, 0.0  ;;  %v1130_v56 = vmul.f32 %v2194_v60, %v2194_v60 }
 0x179   : > { %v1015_v39 = vadd.f32 %v1014_v44, %v1013_v31  ;;  %v1214_v43 = vadd.f32 %v1213_v35, %v1212_v27  ;;  %v1127_v44 = vmul.f32 %v2174_v37, %v2174_v37  ;;  %v1128_v35 = vmul.f32 %v2201_v1, %v2201_v1 }
 0x17a   : > { %v1229_v33 = vsel %vm881_vm1, %v1125_v22, 0.0  ;;  %v1036_v37 = vsel %vm881_vm1, %v2217_v12, 0.0  ;;  %v1131_v61 = vmul.f32 %v2210_v7, %v2210_v7  ;;  %v1239_v5 = vsel %vm881_vm1, %v1130_v56, 0.0 }
 0x17b   : > { %v1216_v53 = vadd.f32 %v1215_v46, %v1214_v43  ;;  %v1017_v42 = vadd.f32 %v1016_v49, %v1015_v39  ;;  %v1231_v43 = vsel %vm881_vm1, %v1126_v26, 0.0  ;;  %v1034_v46 = vsel %vm881_vm1, %v2201_v1, 0.0 }
 0x17c   : > { %v1038_v1 = vsel %vm881_vm1, %v2194_v60, 0.0 }
 0x17d   : > { %v1019_v58 = vadd.f32 %v1018_v51, %v1017_v42  ;;  %v1218_v59 = vadd.f32 %v1217_v54, %v1216_v53  ;;  %v1233_v51 = vsel %vm881_vm1, %v1127_v44, 0.0  ;;  %v1235_v53 = vsel %vm881_vm1, %v1128_v35, 0.0 }
 0x17e   : > { %v1129_v42 = vmul.f32 %v2217_v12, %v2217_v12  ;;  %v1040_v12 = vsel %vm881_vm1, %v2210_v7, 0.0  ;;  %v1044_v7 = vsel %vm881_vm1, %v2253_v48, 0.0 }
 0x17f   : > { %v1220_v63 = vadd.f32 %v1219_v55, %v1218_v59  ;;  %v1021_v2 = vadd.f32 %v1020_v47, %v1019_v58 }
 0x180   : > { %v1237_v47 = vsel %vm881_vm1, %v1129_v42, 0.0 }
 0x181   : > { %v1023_v11 = vadd.f32 %v1022_v4, %v1021_v2  ;;  %v1222_v14 = vadd.f32 %v1221_v6, %v1220_v63  ;;  %v1132_v63 = vmul.f32 %v2237_v34, %v2237_v34  ;;  %v1042_v6 = vsel %vm881_vm1, %v2237_v34, 0.0 }
 0x182   : > { %v1046_v34 = vsel %vm881_vm1, %v2230_v29, 0.0 }
 0x183   : > { %v1224_v18 = vadd.f32 %v1223_v15, %v1222_v14  ;;  %v1025_v0 = vadd.f32 %v1024_v13, %v1023_v11  ;;  %v1241_v11 = vsel %vm881_vm1, %v1131_v61, 0.0  ;;  %v1243_v14 = vsel %vm881_vm1, %v1132_v63, 0.0 }
 0x184   : > { %v1133_v15 = vmul.f32 %v2253_v48, %v2253_v48  ;;  %v1048_v48 = vsel %vm881_vm1, %v2246_v40, 0.0  ;;  %v1142_v61 = vmul.f32 %v2302_v45, %v2302_v45 }
 0x185   : > { %v1027_v23 = vadd.f32 %v1026_v16, %v1025_v0  ;;  %v1226_v25 = vadd.f32 %v1225_v19, %v1224_v18  ;;  %v1134_v18 = vmul.f32 %v2230_v29, %v2230_v29 }
 0x186   : > { %v1245_v22 = vsel %vm881_vm1, %v1133_v15, 0.0 }
 0x187   : > { %v1228_v27 = vadd.f32 %v1227_v20, %v1226_v25  ;;  %v1029_v31 = vadd.f32 %v1028_v9, %v1027_v23  ;;  %v1135_v20 = vmul.f32 %v2246_v40, %v2246_v40  ;;  %v1136_v23 = vmul.f32 %v2273_v10, %v2273_v10 }
 0x188   : > { %v1247_v9 = vsel %vm881_vm1, %v1134_v18, 0.0  ;;  %v1052_v40 = vsel %vm881_vm1, %v2289_v21, 0.0 }
 0x189   : > { %v1031_v36 = vadd.f32 %v1030_v32, %v1029_v31  ;;  %v1230_v39 = vadd.f32 %v1229_v33, %v1228_v27  ;;  %v1050_v27 = vsel %vm881_vm1, %v2273_v10, 0.0  ;;  %v1249_v32 = vsel %vm881_vm1, %v1135_v20, 0.0 }
 0x18a   : > { %v1251_v44 = vsel %vm881_vm1, %v1136_v23, 0.0  ;;  %v1137_v33 = vmul.f32 %v2289_v21, %v2289_v21  ;;  %v1054_v10 = vsel %vm881_vm1, %v2266_v3, 0.0  ;;  %v1056_v21 = vsel %vm881_vm1, %v2282_v17, 0.0 }
 0x18b   : > { %v1232_v49 = vadd.f32 %v1231_v43, %v1230_v39  ;;  %v1033_v28 = vadd.f32 %v1032_v41, %v1031_v36  ;;  %v1138_v39 = vmul.f32 %v2266_v3, %v2266_v3 }
 0x18d   : > { %v1035_v54 = vadd.f32 %v1034_v46, %v1033_v28  ;;  %v1234_v55 = vadd.f32 %v1233_v51, %v1232_v49  ;;  %v1139_v46 = vmul.f32 %v2282_v17, %v2282_v17  ;;  %v1253_v49 = vsel %vm881_vm1, %v1137_v33, 0.0 }
 0x18e   : > { %v1140_v28 = vmul.f32 %v2309_v52, %v2309_v52  ;;  %v1255_v42 = vsel %vm881_vm1, %v1138_v39, 0.0  ;;  %v1060_v17 = vsel %vm881_vm1, %v2325_v62, 0.0 }
 0x18f   : > { %v1236_v58 = vadd.f32 %v1235_v53, %v1234_v55  ;;  %v1037_v59 = vadd.f32 %v1036_v37, %v1035_v54  ;;  %v1058_v54 = vsel %vm881_vm1, %v2309_v52, 0.0  ;;  %v1257_v56 = vsel %vm881_vm1, %v1139_v46, 0.0 }
 0x190   : > { %v1259_v37 = vsel %vm881_vm1, %v1140_v28, 0.0  ;;  %v1062_v52 = vsel %vm881_vm1, %v2302_v45, 0.0 }
 0x191   : > { %v1039_v2 = vadd.f32 %v1038_v1, %v1037_v59  ;;  %v1238_v4 = vadd.f32 %v1237_v47, %v1236_v58  ;;  %v1141_v58 = vmul.f32 %v2325_v62, %v2325_v62  ;;  %v1064_v62 = vsel %vm881_vm1, %v2318_v57, 0.0 }
 0x193   : > { %v1240_v8 = vadd.f32 %v1239_v5, %v1238_v4  ;;  %v1041_v60 = vadd.f32 %v1040_v12, %v1039_v2  ;;  %v1143_v2 = vmul.f32 %v2318_v57, %v2318_v57  ;;  %v1261_v4 = vsel %vm881_vm1, %v1141_v58, 0.0 }
 0x194   : > { %v1144_v5 = vmul.f32 %v2345_v30, %v2345_v30  ;;  %v1068_v57 = vsel %vm881_vm1, %v2361_v50, 0.0 }
 0x195   : > { %v1043_v13 = vadd.f32 %v1042_v6, %v1041_v60  ;;  %v1242_v16 = vadd.f32 %v1241_v11, %v1240_v8  ;;  %v1263_v8 = vsel %vm881_vm1, %v1142_v61, 0.0  ;;  %v1066_v60 = vsel %vm881_vm1, %v2345_v30, 0.0 }
 0x196   : > { %v1267_v15 = vsel %vm881_vm1, %v1144_v5, 0.0  ;;  %v1070_v30 = vsel %vm881_vm1, %v2338_v24, 0.0 }
 0x197   : > { %v1244_v0 = vadd.f32 %v1243_v14, %v1242_v16  ;;  %v1045_v19 = vadd.f32 %v1044_v7, %v1043_v13  ;;  %v1265_v14 = vsel %vm881_vm1, %v1143_v2, 0.0  ;;  %v1145_v13 = vmul.f32 %v2361_v50, %v2361_v50 }
 0x198   : > { %v1146_v7 = vmul.f32 %v2338_v24, %v2338_v24 }
 0x199   : > { %v1047_v25 = vadd.f32 %v1046_v34, %v1045_v19  ;;  %v1246_v26 = vadd.f32 %v1245_v22, %v1244_v0  ;;  %v1147_v34 = vmul.f32 %v2354_v38, %v2354_v38  ;;  %v1269_v20 = vsel %vm881_vm1, %v1145_v13, 0.0 }
 0x19b   : > { %v1248_v31 = vadd.f32 %v1247_v9, %v1246_v26  ;;  %v1049_v29 = vadd.f32 %v1048_v48, %v1047_v25  ;;  %v1271_v25 = vsel %vm881_vm1, %v1146_v7, 0.0  ;;  %v1072_v26 = vsel %vm881_vm1, %v2354_v38, 0.0 }
 0x19c   : > { %v1273_v50 = vsel %vm881_vm1, %v1147_v34, 0.0 }
 0x19d   : > { %v1051_v35 = vadd.f32 %v1050_v27, %v1049_v29  ;;  %v1250_v36 = vadd.f32 %v1249_v32, %v1248_v31 }
 0x19f   : > { %v1252_v43 = vadd.f32 %v1251_v44, %v1250_v36  ;;  %v1053_v41 = vadd.f32 %v1052_v40, %v1051_v35  ;;  %v946_v40 = vld [vmem:[#allocation5] sm:$0x1] }
 0x1a1   : > { %v1055_v51 = vadd.f32 %v1054_v10, %v1053_v41  ;;  %v1254_v53 = vadd.f32 %v1253_v49, %v1252_v43  ;;  %v1083_v41 = vld [vmem:[#allocation6] sm:$0x1] }
 0x1a3   : > { %v1256_v55 = vadd.f32 %v1255_v42, %v1254_v53  ;;  %v1057_v3 = vadd.f32 %v1056_v21, %v1055_v51 }
 0x1a5   : > { %v1059_v59 = vadd.f32 %v1058_v54, %v1057_v3  ;;  %v1258_v1 = vadd.f32 %v1257_v56, %v1256_v55 }
 0x1a7   : > { %v1260_v47 = vadd.f32 %v1259_v37, %v1258_v1  ;;  %v1061_v63 = vadd.f32 %v1060_v17, %v1059_v59 }
 0x1a9   : > { %v1063_v12 = vadd.f32 %v1062_v52, %v1061_v63  ;;  %v1262_v6 = vadd.f32 %v1261_v4, %v1260_v47 }
 0x1ab   : > { %v1264_v11 = vadd.f32 %v1263_v8, %v1262_v6  ;;  %v1065_v45 = vadd.f32 %v1064_v62, %v1063_v12 }
 0x1ad   : > { %v1067_v16 = vadd.f32 %v1066_v60, %v1065_v45  ;;  %v1266_v18 = vadd.f32 %v1265_v14, %v1264_v11 }
 0x1af   : > { %v1268_v0 = vadd.f32 %v1267_v15, %v1266_v18  ;;  %v1069_v19 = vadd.f32 %v1068_v57, %v1067_v16 }
 0x1b1   : > { %v1071_v22 = vadd.f32 %v1070_v30, %v1069_v19  ;;  %v1270_v23 = vadd.f32 %v1269_v20, %v1268_v0 }
 0x1b3   : > { %v1073_v9 = vadd.f32 %v1072_v26, %v1071_v22  ;;  %v1272_v48 = vadd.f32 %v1271_v25, %v1270_v23 }
 0x1b5   : > { %v1074_v27 = vrot.slane %v1073_v9, 4  ;;  %v1274_v31 = vadd.f32 %v1273_v50, %v1272_v48 }
 0x1b7   : > { %v1075_v24 = vadd.f32 %v1074_v27, %v1073_v9  ;;  %v1275_v29 = vrot.slane %v1274_v31, 4 }
 0x1b9   : > { %v1076_v32 = vrot.slane %v1075_v24, 2  ;;  %v1276_v44 = vadd.f32 %v1275_v29, %v1274_v31 }
 0x1bb   : > { %v1077_v33 = vadd.f32 %v1076_v32, %v1075_v24  ;;  %v1277_v35 = vrot.slane %v1276_v44, 2 }
 0x1bd   : > { %v1078_v36 = vrot.slane %v1077_v33, 1  ;;  %v1278_v39 = vadd.f32 %v1277_v35, %v1276_v44 }
 0x1bf   : > { %v1079_v43 = vadd.f32 %v1078_v36, %v1077_v33  ;;  %v1279_v38 = vrot.slane %v1278_v39, 1 }
 0x1c1   : > { %v1080_v10 = vadd.f32 %v1079_v43, %v946_v40  ;;  %v1280_v46 = vadd.f32 %v1279_v38, %v1278_v39 }
 0x1c3   : > { %1082 = vst.msk [vmem:[#allocation5] sm:$0x1] %vm1081_vm2, %v1080_v10  ;;  %v1281_v49 = vadd.f32 %v1280_v46, %v1083_v41 }
 0x1c4   : > { %1789 = shalt.err (!%p1786_p1)
}
 0x1c5   : > { %s1790_s28 = scalar_lea.hbm %s2616_s3, 16 }
 0x1c6   : > { %p1791_p2 = scmp.ne.s32.totalorder %s2616_s3, %s1790_s28  ;;  %p1796_p3 = scmp.lt.u32.totalorder %s1790_s28, %s2616_s3 }
 0x1c8   : > { %p1792_p11 = pnand %p1791_p2, %p2537_p7 }
 0x1ca   : > { %p1793_p13 = pneg %p1792_p11 }
 0x1cc   : > { %p1798_p4 = pnand %p1796_p3, %p1793_p13 }
 0x1ce   : > { %1801 = shalt.err (!%p1798_p4)
}
 0x1cf   : > { %1637 = dma.vmem_to_hbm [thread:$0]  (%p2537_p7), %s1305_s10, 16, %s2616_s3, [#allocation4]   ;;  %1282 = vst.msk [vmem:[#allocation6] sm:$0x1] %vm1081_vm2, %v1281_v49 }
 0x1d0   : > { %s1802_s13 = scalar_lea.vmem %s2542_s23, 16  ;;  %s1808_s15 = scalar_lea.vmem %s2542_s23, 32 }
 0x1d1   : > { %p1803_p9 = scmp.ne.s32.totalorder %s2542_s23, %s1802_s13  ;;  %p1809_p8 = scmp.lt.s32.totalorder %s2542_s23, %s2542_s23 }
 0x1d2   : > { %p1810_p10 = scmp.lt.s32.totalorder %s1808_s15, %s1802_s13 }
 0x1d3   : > { %p1804_p5 = pnand %p1803_p9, %p2537_p7 }
 0x1d4   : > { %p1811_p12 = por %p1810_p10, %p1809_p8 }
 0x1d5   : > { %p1805_p6 = pneg %p1804_p5 }
 0x1d7   : > { %p1812_p0 = pnand %p1811_p12, %p1805_p6 }
 0x1d9   : > { %1815 = shalt.err (!%p1812_p0)
}
 0x1da   : > { %s1816_s14 = scalar_lea.hbm %s2617_s4, 16 }
 0x1db   : > { %p1817_p1 = scmp.ne.s32.totalorder %s2617_s4, %s1816_s14  ;;  %p1822_p13 = scmp.lt.u32.totalorder %s1816_s14, %s2617_s4 }
 0x1dd   : > { %p1818_p2 = pnand %p1817_p1, %p2537_p7 }
 0x1df   : > { %p1819_p11 = pneg %p1818_p2 }
 0x1e1   : > { %p1824_p3 = pnand %p1822_p13, %p1819_p11 }
 0x1e3   : > { %1827 = shalt.err (!%p1824_p3)
}
 0x1e4   : > { %1639 = dma.vmem_to_hbm [thread:$0]  (%p2537_p7), %s2542_s23, 16, %s2617_s4, [#allocation7]  }
 0x1e5   : > { %1857 = dma.done.wait (%p2537_p7), [#allocation4], 16  }
 0x1e6   : > { %1859 = vsyncadd (%p2537_p7), [#allocation4], 4294967280 }
 0x1e7   : > { %1861 = dma.done.wait (%p2537_p7), [#allocation7], 16  }
 0x1e8   : > { %1863 = vsyncadd (%p2537_p7), [#allocation7], 4294967280 }
 0x1e9 PF: > { %s20_s20 = sadd.s32 1, %s1886_s20   ;;  %s2622_s15 = smov %s1870_s16 }
 0x1ea   : > { %p17_p4 = scmp.ge.s32.totalorder %s20_s20, 6   ;;  %s2623_s16 = smov %s1874_s17 }
 0x1eb   : > { %s2624_s17 = smov %s1970_s27  ;;  %s2625_s18 = smov %s1882_s19 }
 0x1ec   : > { %s2626_s19 = smov %s2628_s22  ;;  %19 = sbr.rel (!%p17_p4) target bundleno = 6 (0x6), region = 94 }
 0x1f3   :  { %1345 = vsyncpa [#allocation3], 1 }
 0x1f4   :  { %1347 = vsyncpa [#allocation3 + $0x1], 1 }
 0x1f5   :  { %1348 = vsyncpa [#allocation4], 1 }
 0x1f6   :  { %1350 = vsyncpa [#allocation4 + $0x1], 1 }
 0x1f7   :  { %1351 = vsyncpa [#allocation7], 1 }

</bundles_post_ra>
